<compile_context>
chip_gen: v6e
topology: v6e:2x2x1
jax: 0.10.0
libtpu: 0.0.40
codegen_flags: <defaults>
</compile_context>

<pallas_src>
import functools
import math

import jax
import jax.numpy as jnp
from jax.experimental import pallas as pl
from jax.experimental.pallas import tpu as pltpu

NEG_INF = -1e9
_VMEM_LIMIT = 32 * 1024 * 1024  # safe scoped-VMEM budget on v5e / v6e / v7x


def _pick_tile(dim, candidates):
    """Largest candidate tile that evenly divides `dim`, else the full dim."""
    for c in candidates:
        if dim % c == 0:
            return c
    return dim


# --------------------------------------------------------------------------
# Fused tiled linear kernel: y = act(x @ w + b) [+ residual] [-> LayerNorm]
# --------------------------------------------------------------------------
def _fused_linear_kernel(*refs, activation, has_residual, has_ln, ln_eps):
    x_ref, w_ref, b_ref = refs[0], refs[1], refs[2]
    idx = 3
    r_ref = None
    g_ref = beta_ref = None
    if has_residual:
        r_ref = refs[idx]
        idx += 1
    if has_ln:
        g_ref, beta_ref = refs[idx], refs[idx + 1]
        idx += 2
    o_ref, acc_ref = refs[idx], refs[idx + 1]

    @pl.when(pl.program_id(2) == 0)
    def _init():
        acc_ref[...] = jnp.zeros_like(acc_ref)

    # bf16 MXU operands, f32 accumulation.
    acc_ref[...] += jnp.dot(x_ref[...].astype(jnp.bfloat16),
                            w_ref[...].astype(jnp.bfloat16),
                            preferred_element_type=jnp.float32)

    @pl.when(pl.program_id(2) == pl.num_programs(2) - 1)
    def _finalize():
        y = acc_ref[...] + b_ref[...].astype(jnp.float32)
        if activation == "gelu":
            # tanh-approx GELU (EUP tanh).
            # TODO(synk): reference BERT/PreSumm uses exact erf GELU (small drift).
            y = 0.5 * y * (1.0 + jnp.tanh(
                0.7978845608028654 * (y + 0.044715 * y * y * y)))
        if has_residual:
            y = y + r_ref[...].astype(jnp.float32)
        if has_ln:
            mu = jnp.mean(y, axis=-1, keepdims=True)
            yc = y - mu
            var = jnp.mean(yc * yc, axis=-1, keepdims=True)
            y = yc * jax.lax.rsqrt(var + ln_eps) * g_ref[...] + beta_ref[...]
        o_ref[...] = y.astype(o_ref.dtype)


def fused_linear(x2d, w, b, activation=None, residual=None, ln=None):
    """y = act(x2d @ w + b); optionally += residual; optionally LayerNorm over N."""
    M, K = x2d.shape
    Kw, N = w.shape
    assert K == Kw
    tm = _pick_tile(M, (512, 256, 128))
    tk = _pick_tile(K, (512, 256, 128))
    # LayerNorm epilogue needs the full feature dim resident.
    tn = N if ln is not None else _pick_tile(N, (512, 256, 128))
    grid = (M // tm, N // tn, K // tk)

    in_specs = [
        pl.BlockSpec((tm, tk), lambda i, j, k: (i, k)),
        pl.BlockSpec((tk, tn), lambda i, j, k: (k, j)),
        pl.BlockSpec((1, tn), lambda i, j, k: (0, j)),
    ]
    args = [x2d, w, b.reshape(1, N)]
    if residual is not None:
        in_specs.append(pl.BlockSpec((tm, tn), lambda i, j, k: (i, j)))
        args.append(residual)
    ln_eps = 1e-6
    if ln is not None:
        g, beta, ln_eps = ln
        in_specs.append(pl.BlockSpec((1, tn), lambda i, j, k: (0, j)))
        in_specs.append(pl.BlockSpec((1, tn), lambda i, j, k: (0, j)))
        args.append(g.reshape(1, N))
        args.append(beta.reshape(1, N))

    bytes_accessed = (x2d.size * x2d.dtype.itemsize
                      + w.size * w.dtype.itemsize + 4 * N + 4 * M * N)
    if residual is not None:
        bytes_accessed += 4 * M * N
    cost = pl.CostEstimate(
        flops=2 * M * N * K,
        transcendentals=(M * N if activation == "gelu" else 0),
        bytes_accessed=int(bytes_accessed))

    return pl.pallas_call(
        functools.partial(_fused_linear_kernel, activation=activation,
                          has_residual=residual is not None,
                          has_ln=ln is not None, ln_eps=ln_eps),
        grid=grid,
        in_specs=in_specs,
        out_specs=pl.BlockSpec((tm, tn), lambda i, j, k: (i, j)),
        out_shape=jax.ShapeDtypeStruct((M, N), jnp.float32),
        scratch_shapes=[pltpu.VMEM((tm, tn), jnp.float32)],
        compiler_params=pltpu.CompilerParams(
            dimension_semantics=("parallel", "parallel", "arbitrary"),
            vmem_limit_bytes=_VMEM_LIMIT),
        cost_estimate=cost,
    )(*args)


# --------------------------------------------------------------------------
# Standalone (pre-)LayerNorm, tiled over rows
# --------------------------------------------------------------------------
def _layernorm_kernel(x_ref, g_ref, b_ref, o_ref, *, eps):
    x = x_ref[...].astype(jnp.float32)
    mu = jnp.mean(x, axis=-1, keepdims=True)
    xc = x - mu
    var = jnp.mean(xc * xc, axis=-1, keepdims=True)
    o_ref[...] = (xc * jax.lax.rsqrt(var + eps) * g_ref[...] + b_ref[...]
                  ).astype(o_ref.dtype)


def pallas_layernorm(x2d, gamma, beta, eps):
    M, H = x2d.shape
    tm = _pick_tile(M, (1024, 512, 256, 128))
    return pl.pallas_call(
        functools.partial(_layernorm_kernel, eps=eps),
        grid=(M // tm,),
        in_specs=[pl.BlockSpec((tm, H), lambda i: (i, 0)),
                  pl.BlockSpec((1, H), lambda i: (0, 0)),
                  pl.BlockSpec((1, H), lambda i: (0, 0))],
        out_specs=pl.BlockSpec((tm, H), lambda i: (i, 0)),
        out_shape=jax.ShapeDtypeStruct((M, H), jnp.float32),
        compiler_params=pltpu.CompilerParams(
            dimension_semantics=("parallel",), vmem_limit_bytes=_VMEM_LIMIT),
    )(x2d, gamma.reshape(1, H), beta.reshape(1, H))


# --------------------------------------------------------------------------
# Fused tag-embedding matmul + residual add: o = x + tags @ tag_w
# --------------------------------------------------------------------------
def _tag_add_kernel(x_ref, t_ref, w_ref, o_ref):
    o_ref[...] = (x_ref[...]
                  + jnp.dot(t_ref[...], w_ref[...],
                            preferred_element_type=jnp.float32)).astype(o_ref.dtype)


def pallas_tag_add(x2d, tags2d, tag_w):
    M, H = x2d.shape
    T = tags2d.shape[1]
    tm = _pick_tile(M, (1024, 512, 256, 128))
    return pl.pallas_call(
        _tag_add_kernel,
        grid=(M // tm,),
        in_specs=[pl.BlockSpec((tm, H), lambda i: (i, 0)),
                  pl.BlockSpec((tm, T), lambda i: (i, 0)),
                  pl.BlockSpec((T, H), lambda i: (0, 0))],
        out_specs=pl.BlockSpec((tm, H), lambda i: (i, 0)),
        out_shape=jax.ShapeDtypeStruct((M, H), jnp.float32),
        compiler_params=pltpu.CompilerParams(
            dimension_semantics=("parallel",), vmem_limit_bytes=_VMEM_LIMIT),
    )(x2d, tags2d, tag_w)


# --------------------------------------------------------------------------
# Attention core: one (batch, head) per grid step; masks built in-kernel
# --------------------------------------------------------------------------
def _mha_kernel(q_ref, k_ref, v_ref, km_ref, o_ref, *, scale, causal):
    q = q_ref[0].astype(jnp.float32)      # (Lq, dh)
    k = k_ref[0].astype(jnp.float32)      # (Lk, dh)
    v = v_ref[0].astype(jnp.float32)      # (Lk, dh)
    km = km_ref[0]                        # (1, Lk): 1.0 valid / 0.0 pad
    s = jax.lax.dot_general(q, k, (((1,), (1,)), ((), ())),
                            preferred_element_type=jnp.float32) * scale
    s = s + (1.0 - km) * NEG_INF          # key padding mask (broadcast in-kernel)
    if causal:
        Lq, Lk = s.shape
        row = jax.lax.broadcasted_iota(jnp.int32, (Lq, Lk), 0)
        col = jax.lax.broadcasted_iota(jnp.int32, (Lq, Lk), 1)
        s = jnp.where(col > row, NEG_INF, s)
    s = s - jnp.max(s, axis=-1, keepdims=True)
    p = jnp.exp(s)
    p = p * pl.reciprocal(jnp.sum(p, axis=-1, keepdims=True), approx=True)
    o_ref[0] = jnp.dot(p, v, preferred_element_type=jnp.float32).astype(o_ref.dtype)


def pallas_mha(q, k, v, key_mask, heads, causal):
    # q: (B*heads, Lq, dh); k, v: (B*heads, Lk, dh); key_mask: (B, 1, Lk) f32
    BH, Lq, dh = q.shape
    Lk = k.shape[1]
    scale = 1.0 / math.sqrt(dh)
    # TODO(synk): flash-style KV-blocked online softmax (extra 'arbitrary' grid
    # axis + m/l/acc scratch) for long sequences; full Lq x Lk scores are fine here.
    return pl.pallas_call(
        functools.partial(_mha_kernel, scale=scale, causal=causal),
        grid=(BH,),
        in_specs=[
            pl.BlockSpec((1, Lq, dh), lambda i: (i, 0, 0)),
            pl.BlockSpec((1, Lk, dh), lambda i: (i, 0, 0)),
            pl.BlockSpec((1, Lk, dh), lambda i: (i, 0, 0)),
            pl.BlockSpec((1, 1, Lk), lambda i: (i // heads, 0, 0)),  # not per-head
        ],
        out_specs=pl.BlockSpec((1, Lq, dh), lambda i: (i, 0, 0)),
        out_shape=jax.ShapeDtypeStruct((BH, Lq, dh), jnp.float32),
        compiler_params=pltpu.CompilerParams(
            dimension_semantics=("parallel",), vmem_limit_bytes=_VMEM_LIMIT),
    )(q, k, v, key_mask)


# --------------------------------------------------------------------------
# Composite attention blocks (glue in XLA; compute in Pallas)
# --------------------------------------------------------------------------
def _split_heads(x2d, B, L, heads):
    H = x2d.shape[1]
    dh = H // heads
    return x2d.reshape(B, L, heads, dh).transpose(0, 2, 1, 3).reshape(B * heads, L, dh)


def _merge_heads(x, B, heads):
    _, L, dh = x.shape
    return x.reshape(B, heads, L, dh).transpose(0, 2, 1, 3).reshape(B * L, heads * dh)


def self_attention_block(x, p, heads, key_mask, causal, residual2d, ln):
    """out-projection is fused with residual add (+ optional LayerNorm)."""
    B, L, H = x.shape
    dh = H // heads
    qkv = fused_linear(x.reshape(B * L, H), p["w_qkv"], p["b_qkv"])      # (B*L, 3H)
    qkv = qkv.reshape(B, L, 3, heads, dh).transpose(2, 0, 3, 1, 4)
    qkv = qkv.reshape(3, B * heads, L, dh)
    ctx = pallas_mha(qkv[0], qkv[1], qkv[2], key_mask, heads, causal)
    return fused_linear(_merge_heads(ctx, B, heads), p["wo"], p["bo"],
                        residual=residual2d, ln=ln)


def cross_attention_block(xq, mem, p, heads, key_mask, residual2d, ln=None):
    B, Lq, H = xq.shape
    Lk = mem.shape[1]
    dh = H // heads
    q = _split_heads(fused_linear(xq.reshape(B * Lq, H), p["wq"], p["bq"]), B, Lq, heads)
    kv = fused_linear(mem.reshape(B * Lk, H), p["w_kv"], p["b_kv"])      # (B*Lk, 2H)
    kv = kv.reshape(B, Lk, 2, heads, dh).transpose(2, 0, 3, 1, 4).reshape(2, B * heads, Lk, dh)
    ctx = pallas_mha(q, kv[0], kv[1], key_mask, heads, False)
    return fused_linear(_merge_heads(ctx, B, heads), p["wo"], p["bo"],
                        residual=residual2d, ln=ln)


def sinusoidal_pe(length, dim):
    pos = jnp.arange(length, dtype=jnp.float32)[:, None]
    div = jnp.exp(jnp.arange(0, dim, 2, dtype=jnp.float32) * -(math.log(10000.0) / dim))
    pe = jnp.zeros((length, dim), jnp.float32)
    pe = pe.at[:, 0::2].set(jnp.sin(pos * div))
    pe = pe.at[:, 1::2].set(jnp.cos(pos * div))
    return pe


# --------------------------------------------------------------------------
# Forward pass
# --------------------------------------------------------------------------
def abs_summarizer_forward(params, src, tgt, segs, clss, mask_src, mask_tgt,
                           mask_cls, tag_src, tag_tgt, cfg):
    del clss, mask_cls, mask_tgt  # only used in training-only branches
    B, Ls = src.shape
    H, heads = cfg["hidden"], cfg["heads"]

    # segs_src = (1 - segs % 2) * mask_src.long()
    segs_src = (1 - segs % 2) * mask_src.astype(jnp.int32)

    # ---------------- BERT encoder (post-LN) ----------------
    bp = params["bert"]
    emb = (bp["word_emb"][src]
           + bp["pos_emb"][jnp.arange(Ls)][None, :, :]
           + bp["type_emb"][segs_src])
    x2d = pallas_layernorm(emb.reshape(B * Ls, H), bp["emb_ln_g"], bp["emb_ln_b"],
                           eps=1e-12)
    x = x2d.reshape(B, Ls, H)
    src_key_mask = mask_src.astype(jnp.float32).reshape(B, 1, Ls)

    for layer in bp["layers"]:
        x2d = x.reshape(B * Ls, H)
        # LN(x + SelfAttn(x)); residual+LN fused into the output projection.
        h2d = self_attention_block(x, layer["attn"], heads, src_key_mask, False,
                                   x2d, (layer["ln1_g"], layer["ln1_b"], 1e-12))
        # LN(h + FFN(h)); GELU fused into w1, residual+LN fused into w2.
        f1 = fused_linear(h2d, layer["w1"], layer["b1"], activation="gelu")
        x2d = fused_linear(f1, layer["w2"], layer["b2"], residual=h2d,
                           ln=(layer["ln2_g"], layer["ln2_b"], 1e-12))
        x = x2d.reshape(B, Ls, H)

    # ---------------- tag embedding matmul fused with residual add ----------------
    T = tag_src.shape[2]
    top_vec2d = pallas_tag_add(x2d, tag_src.reshape(B * Ls, T).astype(jnp.float32),
                               params["tag_emb"][1:1 + T])        # weight[1:1+T]
    top_vec = top_vec2d.reshape(B, Ls, H)                          # tag_drop: eval no-op

    # ---------------- Transformer decoder (pre-LN, PreSumm-style) ----------------
    dp = params["dec"]
    tgt_in = tgt[:, :-1]
    tag_tgt_in = tag_tgt[:, :-1]
    Lt = tgt_in.shape[1]
    emb_d = dp["tgt_emb"][tgt_in] * math.sqrt(H)
    pe = sinusoidal_pe(Lt, H)
    Td = tag_tgt_in.shape[2]
    base2d = (emb_d + pe[None, :, :]).reshape(B * Lt, H)
    # TODO(synk): exact tag-injection point inside EDU_EXT_RW's TransformerDecoder is not
    # in the provided source; tags are added to the scaled + positional target embeddings.
    y2d = pallas_tag_add(base2d, tag_tgt_in.reshape(B * Lt, Td).astype(jnp.float32),
                         params["tag_emb"][1:1 + Td])
    y = y2d.reshape(B, Lt, H)

    tgt_key_mask = (tgt_in != 0).astype(jnp.float32).reshape(B, 1, Lt)
    dec_src_key_mask = (src != 0).astype(jnp.float32).reshape(B, 1, Ls)

    for layer in dp["layers"]:
        y2d = y.reshape(B * Lt, H)
        h = pallas_layernorm(y2d, layer["ln1_g"], layer["ln1_b"], eps=1e-6
                             ).reshape(B, Lt, H)
        # q = SelfAttn(LN(y)) + y   (residual fused into output projection)
        q2d = self_attention_block(h, layer["self_attn"], heads, tgt_key_mask,
                                   True, y2d, None)
        hq = pallas_layernorm(q2d, layer["ln2_g"], layer["ln2_b"], eps=1e-6
                              ).reshape(B, Lt, H)
        # ff_in = CtxAttn(LN(q), top_vec) + q
        ffin2d = cross_attention_block(hq, top_vec, layer["ctx_attn"], heads,
                                       dec_src_key_mask, q2d, None)
        # y = FFN(LN(ff_in)) + ff_in
        hf2d = pallas_layernorm(ffin2d, layer["ffn_ln_g"], layer["ffn_ln_b"], eps=1e-6)
        inter = fused_linear(hf2d, layer["w1"], layer["b1"], activation="gelu")
        y2d = fused_linear(inter, layer["w2"], layer["b2"], residual=ffin2d)
        y = y2d.reshape(B, Lt, H)

    dec_out = pallas_layernorm(y.reshape(B * Lt, H), dp["ln_g"], dp["ln_b"],
                               eps=1e-6).reshape(B, Lt, H)
    return dec_out, None


# --------------------------------------------------------------------------
# Deterministic parameter init (matches module's normal(0, 0.02) / LN init).
# Matmul weights are stored in bf16 (MXU operands); biases/LN/embeddings in f32.
# --------------------------------------------------------------------------
def init_params(key, cfg):
    vocab, H, FF = cfg["vocab"], cfg["hidden"], cfg["ff"]
    keys = iter(jax.random.split(key, 512))

    def nrm(shape):
        return jax.random.normal(next(keys), shape, jnp.float32) * 0.02

    def nrm_bf16(shape):
        return nrm(shape).astype(jnp.bfloat16)

    def zeros(n):
        return jnp.zeros((n,), jnp.float32)

    def ones(n):
        return jnp.ones((n,), jnp.float32)

    def self_attn_params():
        return {"w_qkv": jnp.concatenate([nrm((H, H)), nrm((H, H)), nrm((H, H))],
                                         axis=1).astype(jnp.bfloat16),
                "b_qkv": zeros(3 * H),
                "wo": nrm_bf16((H, H)), "bo": zeros(H)}

    def cross_attn_params():
        return {"wq": nrm_bf16((H, H)), "bq": zeros(H),
                "w_kv": jnp.concatenate([nrm((H, H)), nrm((H, H))],
                                        axis=1).astype(jnp.bfloat16),
                "b_kv": zeros(2 * H),
                "wo": nrm_bf16((H, H)), "bo": zeros(H)}

    bert_layers = []
    for _ in range(cfg["enc_layers"]):
        bert_layers.append({
            "attn": self_attn_params(),
            "ln1_g": ones(H), "ln1_b": zeros(H),
            "w1": nrm_bf16((H, FF)), "b1": zeros(FF),
            "w2": nrm_bf16((FF, H)), "b2": zeros(H),
            "ln2_g": ones(H), "ln2_b": zeros(H),
        })
    bert = {"word_emb": nrm((vocab, H)),
            "pos_emb": nrm((cfg["max_pos"], H)),
            "type_emb": nrm((2, H)),
            "emb_ln_g": ones(H), "emb_ln_b": zeros(H),
            "layers": bert_layers}

    dec_layers = []
    for _ in range(cfg["dec_layers"]):
        dec_layers.append({
            "ln1_g": ones(H), "ln1_b": zeros(H),
            "self_attn": self_attn_params(),
            "ln2_g": ones(H), "ln2_b": zeros(H),
            "ctx_attn": cross_attn_params(),
            "ffn_ln_g": ones(H), "ffn_ln_b": zeros(H),
            "w1": nrm_bf16((H, FF)), "b1": zeros(FF),
            "w2": nrm_bf16((FF, H)), "b2": zeros(H),
        })
    tgt_emb = nrm((vocab, H))
    if cfg["use_bert_emb"]:
        tgt_emb = bert["word_emb"]          # args.use_bert_emb: tie to BERT word embeddings
    dec = {"tgt_emb": tgt_emb, "layers": dec_layers,
           "ln_g": ones(H), "ln_b": zeros(H)}

    tag_emb = nrm((cfg["max_n_tags"], H)).at[0].set(0.0)   # padding_idx=0 row zeroed
    return {"bert": bert, "dec": dec, "tag_emb": tag_emb}


# --------------------------------------------------------------------------
if __name__ == "__main__":
    cfg = dict(vocab=64, hidden=32, ff=64, heads=4,
               enc_layers=2, dec_layers=2, max_pos=16,
               max_n_tags=6, use_bert_emb=True)
    B, Ls, Lt, T = 2, 8, 8, 4

    key = jax.random.PRNGKey(0)
    k_par, k_src, k_tgt, k_segs, k_ts, k_tt = jax.random.split(key, 6)
    params = init_params(k_par, cfg)

    src = jax.random.randint(k_src, (B, Ls), 1, cfg["vocab"])
    mask_src = jnp.ones((B, Ls), jnp.bool_).at[1, -2:].set(False)
    src = jnp.where(mask_src, src, 0)
    tgt = jax.random.randint(k_tgt, (B, Lt), 1, cfg["vocab"])
    mask_tgt = jnp.ones((B, Lt), jnp.bool_)
    segs = jax.random.randint(k_segs, (B, Ls), 0, 4)
    clss = jnp.zeros((B, 3), jnp.int32)
    mask_cls = jnp.ones((B, 3), jnp.bool_)
    tag_src = (jax.random.uniform(k_ts, (B, Ls, T)) < 0.3).astype(jnp.float32)
    tag_tgt = (jax.random.uniform(k_tt, (B, Lt, T)) < 0.3).astype(jnp.float32)

    dec_out, _ = abs_summarizer_forward(params, src, tgt, segs, clss, mask_src,
                                        mask_tgt, mask_cls, tag_src, tag_tgt, cfg)
    jax.block_until_ready(dec_out)
    assert dec_out.shape == (B, Lt - 1, cfg["hidden"])
    assert bool(jnp.all(jnp.isfinite(dec_out)))
    print("KERNEL_OK")
</pallas_src>

<mosaic_0001>
module attributes {stable_mosaic.version = 11 : i64} {
  func.func @_layernorm_kernel(%arg0: i32, %arg1: memref<16x32xf32, #tpu.memory_space<vmem>>, %arg2: memref<1x32xf32, #tpu.memory_space<vmem>>, %arg3: memref<1x32xf32, #tpu.memory_space<vmem>>, %arg4: memref<16x32xf32, #tpu.memory_space<vmem>>) attributes {dimension_semantics = [#tpu.dimension_semantics<parallel>], iteration_bounds = array<i64: 1>, scalar_prefetch = 0 : i64, scratch_operands = 0 : i64, tpu.core_type = #tpu.core_type<tc>, window_params = [{transform_indices = @transform_0, window_bounds = array<i64: 16, 32>}, {pipeline_mode = #tpu.pipeline_mode<synchronous>, transform_indices = @transform_1, window_bounds = array<i64: 1, 32>}, {pipeline_mode = #tpu.pipeline_mode<synchronous>, transform_indices = @transform_2, window_bounds = array<i64: 1, 32>}, {transform_indices = @transform_3, window_bounds = array<i64: 16, 32>}]} {
    %c0 = arith.constant 0 : index
    %c0_0 = arith.constant 0 : index
    %0 = vector.load %arg1[%c0, %c0_0] : memref<16x32xf32, #tpu.memory_space<vmem>>, vector<16x32xf32>
    %cst = arith.constant dense<0.000000e+00> : vector<16xf32>
    %1 = vector.multi_reduction <add>, %0, %cst [1] : vector<16x32xf32> to vector<16xf32>
    %2 = vector.shape_cast %1 : vector<16xf32> to vector<16x1xf32>
    %cst_1 = arith.constant 3.200000e+01 : f32
    %3 = vector.broadcast %cst_1 : f32 to vector<16x1xf32>
    %4 = arith.divf %2, %3 : vector<16x1xf32>
    %5 = vector.broadcast %4 : vector<16x1xf32> to vector<16x32xf32>
    %6 = arith.subf %0, %5 : vector<16x32xf32>
    %7 = arith.mulf %6, %6 : vector<16x32xf32>
    %cst_2 = arith.constant dense<0.000000e+00> : vector<16xf32>
    %8 = vector.multi_reduction <add>, %7, %cst_2 [1] : vector<16x32xf32> to vector<16xf32>
    %9 = vector.shape_cast %8 : vector<16xf32> to vector<16x1xf32>
    %cst_3 = arith.constant 3.200000e+01 : f32
    %10 = vector.broadcast %cst_3 : f32 to vector<16x1xf32>
    %11 = arith.divf %9, %10 : vector<16x1xf32>
    %cst_4 = arith.constant 9.99999996E-13 : f32
    %12 = vector.broadcast %cst_4 : f32 to vector<16x1xf32>
    %13 = arith.addf %11, %12 : vector<16x1xf32>
    %14 = math.rsqrt %13 : vector<16x1xf32>
    %15 = vector.broadcast %14 : vector<16x1xf32> to vector<16x32xf32>
    %16 = arith.mulf %6, %15 : vector<16x32xf32>
    %c0_5 = arith.constant 0 : index
    %c0_6 = arith.constant 0 : index
    %17 = vector.load %arg2[%c0_5, %c0_6] : memref<1x32xf32, #tpu.memory_space<vmem>>, vector<1x32xf32>
    %18 = vector.broadcast %17 : vector<1x32xf32> to vector<16x32xf32>
    %19 = arith.mulf %16, %18 : vector<16x32xf32>
    %c0_7 = arith.constant 0 : index
    %c0_8 = arith.constant 0 : index
    %20 = vector.load %arg3[%c0_7, %c0_8] : memref<1x32xf32, #tpu.memory_space<vmem>>, vector<1x32xf32>
    %21 = vector.broadcast %20 : vector<1x32xf32> to vector<16x32xf32>
    %22 = arith.addf %19, %21 : vector<16x32xf32>
    %c0_9 = arith.constant 0 : index
    %c0_10 = arith.constant 0 : index
    %23 = vector.load %arg4[%c0_9, %c0_10] : memref<16x32xf32, #tpu.memory_space<vmem>>, vector<16x32xf32>
    tpu.vector_store %arg4[%c0_9, %c0_10], %22 {strides = array<i32>} : memref<16x32xf32, #tpu.memory_space<vmem>>, vector<16x32xf32>,
    return
  }
  func.func @transform_0(%arg0: i32) -> (i32, i32) {
    %c0_i32 = arith.constant 0 : i32
    %c0_i32_0 = arith.constant 0 : i32
    return %arg0, %c0_i32 : i32, i32
  }
  func.func @transform_1(%arg0: i32) -> (i32, i32) {
    %c0_i32 = arith.constant 0 : i32
    %c0_i32_0 = arith.constant 0 : i32
    %c0_i32_1 = arith.constant 0 : i32
    return %c0_i32, %c0_i32_0 : i32, i32
  }
  func.func @transform_2(%arg0: i32) -> (i32, i32) {
    %c0_i32 = arith.constant 0 : i32
    %c0_i32_0 = arith.constant 0 : i32
    %c0_i32_1 = arith.constant 0 : i32
    return %c0_i32, %c0_i32_0 : i32, i32
  }
  func.func @transform_3(%arg0: i32) -> (i32, i32) {
    %c0_i32 = arith.constant 0 : i32
    %c0_i32_0 = arith.constant 0 : i32
    return %arg0, %c0_i32 : i32, i32
  }
}

</mosaic_0001>

<bundles_post_ra>
// kernel: tpu_custom_call.1
= control target key start
LH: loop header
LB: loop body
LE: loop exit
PB: predicated region body
PF: predicated region fallthrough
CT: control target
= control target key end

     0   :  { %8 = vsyncpa [#allocation3], 0  ;;  %s198_s0 = inlined_call_operand.hbm [shape: f32[16,32], index: 0, kind: input, shape index: {}]   ;;  %s199_s1 = inlined_call_operand.vmem [shape: f32[1,32], index: 1, kind: input, shape index: {}]   ;;  %s200_s2 = inlined_call_operand.vmem [shape: f32[1,32], index: 2, kind: input, shape index: {}]   ;;  %s201_s3 = inlined_call_operand.hbm [shape: f32[16,32], index: 3, kind: output, shape index: {}]  }
   0x1   :  { %9 = vsyncpa [#allocation4], 0  ;;  %s150_s12 = smov [#allocation2]  }
   0x2   :  { %s15_s13 = sshll.u32 %s150_s12, 4  ;;  %s16_s13 = int_to_ptr.vmem [resolvable:$true] %s15_s13 }
   0x3   :  { %s114_s14 = scalar_lea.vmem %s16_s13, 256  ;;  %p119_p1 = scmp.lt.s32.totalorder %s16_s13, %s16_s13 }
   0x4   :  { %p115_p0 = scmp.ne.s32.totalorder %s16_s13, %s114_s14  ;;  %p120_p2 = scmp.lt.s32.totalorder %s114_s14, %s114_s14 }
   0x6   :  { %p121_p3 = por %p120_p2, %p119_p1 }
   0x8   :  { %p122_p4 = pnand %p121_p3, %p115_p0 }
   0xa   :  { %125 = shalt.err (!%p122_p4)
}
   0xb   :  { %s151_s15 = smov 128   ;;  %s152_s16 = smov 8  }
   0xc   :  { %21 = dma.hbm_to_vmem [thread:$0]  %s198_s0, 256, %s16_s13, [#allocation3], %s151_s15, %s151_s15, %s152_s16  }
   0xd   :  { %146 = dma.done.wait [#allocation3], 256  }
   0xe   :  { %147 = vsyncadd [#allocation3], 4294967040  ;;  %vm31_vm0 = vcmask 261120   ;;  %v29_v0 = vld [vmem:[#allocation2] sm:$0xff]  ;;  %v30_v1 = vld [vmem:[#allocation2 + $0x8] sm:$0xff]  ;;  %s153_s22 = smov [#allocation5]  }
   0xf   :  { %v32_v2 = vsel %vm31_vm0, %v29_v0, 0.0  ;;  %v35_v3 = vsel %vm31_vm0, %v30_v1, 0.0  ;;  %v96_v21 = vld [vmem:[%s199_s1] ss:$0 sm:$0xff]  ;;  %s84_s23 = sshll.u32 %s153_s22, 4  ;;  %s85_s23 = int_to_ptr.vmem [resolvable:$true] %s84_s23 }
  0x10   :  { %33 = vadd.xlane.f32.xlu0 %v32_v2  ;;  %v97_v23 = vld [vmem:[%s200_s2] ss:$0 sm:$0xff]  ;;  %s126_s24 = scalar_lea.vmem %s85_s23, 256  ;;  %p131_p6 = scmp.lt.s32.totalorder %s85_s23, %s85_s23 }
  0x11   :  { %p127_p5 = scmp.ne.s32.totalorder %s85_s23, %s126_s24  ;;  %p132_p7 = scmp.lt.s32.totalorder %s126_s24, %s126_s24 }
  0x13   :  { %p133_p8 = por %p132_p7, %p131_p6 }
  0x14   :  { %36 = vadd.xlane.f32.xlu0 %v35_v3 }
  0x15   :  { %p134_p9 = pnand %p133_p8, %p127_p5 }
  0x99   :  { %v34_v4 = vpop.xlane.xlu0 %33 }
  0x9a   :  { %v39_v5 = vmul.f32 0.03125, %v34_v4 }
  0x9c   :  { %v41_v6 = vsub.f32 %v29_v0, %v39_v5 }
  0x9d   :  { %v37_v7 = vpop.xlane.xlu0 %36 }
  0x9e   :  { %v40_v8 = vmul.f32 0.03125, %v37_v7  ;;  %v43_v9 = vmul.f32 %v41_v6, %v41_v6 }
  0xa0   :  { %v42_v10 = vsub.f32 %v30_v1, %v40_v8  ;;  %v45_v11 = vsel %vm31_vm0, %v43_v9, 0.0 }
  0xa1   :  { %46 = vadd.xlane.f32.xlu1 %v45_v11 }
  0xa2   :  { %v44_v12 = vmul.f32 %v42_v10, %v42_v10 }
  0xa4   :  { %v48_v13 = vsel %vm31_vm0, %v44_v12, 0.0 }
  0xa5   :  { %49 = vadd.xlane.f32.xlu1 %v48_v13 }
 0x12a   :  { %v47_v14 = vpop.xlane.xlu1 %46 }
 0x12b   :  { %v51_v15 = vmul.f32 0.03125, %v47_v14 }
 0x12d   :  { %v53_v16 = vadd.f32 1e-12, %v51_v15 }
 0x12e   :  { %v50_v17 = vpop.xlane.xlu1 %49 }
 0x12f   :  { %102 = vrsqrt.f32 %v53_v16  ;;  %v52_v18 = vmul.f32 0.03125, %v50_v17 }
 0x131   :  { %v54_v19 = vadd.f32 1e-12, %v52_v18 }
 0x133   :  { %104 = vrsqrt.f32 %v54_v19 }
 0x13c   :  { %v103_v20 = vpop.eup %102 }
 0x13d   :  { %v57_v22 = vmul.f32 %v103_v20, %v41_v6 }
 0x13f   :  { %v66_v24 = vmul.f32 %v96_v21, %v57_v22 }
 0x140   :  { %v105_v25 = vpop.eup %104 }
 0x141   :  { %v58_v26 = vmul.f32 %v105_v25, %v42_v10  ;;  %v75_v27 = vadd.f32 %v97_v23, %v66_v24 }
 0x143   :  { %v67_v28 = vmul.f32 %v96_v21, %v58_v26  ;;  %77 = vst.msk [vmem:[#allocation5] sm:$0xff] %vm31_vm0, %v75_v27 }
 0x145   :  { %v76_v29 = vadd.f32 %v97_v23, %v67_v28 }
 0x147   :  { %78 = vst.msk [vmem:[#allocation5 + $0x8] sm:$0xff] %vm31_vm0, %v76_v29 }
 0x148   :  { %137 = shalt.err (!%p134_p9)
}
 0x149   :  { %90 = dma.vmem_to_hbm [thread:$0]  %s85_s23, 256, %s201_s3, [#allocation4], %s151_s15, %s151_s15, %s152_s16  }
 0x14a   :  { %148 = dma.done.wait [#allocation4], 256  }
 0x14b   :  { %149 = vsyncadd [#allocation4], 4294967040 }
 0x14c   :  { %94 = vsyncpa [#allocation3], 1 }
 0x14d   :  { %95 = vsyncpa [#allocation4], 1 }

</bundles_post_ra>
